<compile_context>
chip_gen: v7x
topology: tpu7x:2x2x1
jax: 0.10.0
libtpu: 0.0.40
codegen_flags: <defaults>
</compile_context>

<pallas_src>
import functools

import jax
import jax.numpy as jnp
from jax import lax
from jax.experimental import pallas as pl
from jax.experimental.pallas import tpu as pltpu


def _tap_slice(start: int, size: int, stride: int):
    # Static-offset (possibly strided) window along one spatial axis.
    return pl.ds(start, size) if stride == 1 else pl.ds(start, size, stride)


def _dilated_conv_kernel(x_ref, w_ref, o_ref, *, ksize, dilation, stride, ho, wo):
    # x_ref : (BT, Hp, Wp, Cin)           zero-padded NHWC input tile
    # w_ref : (ksize*ksize, Cin, Cout)    one (Cin, Cout) matmul RHS per tap
    # o_ref : (BT, Ho, Wo, Cout)
    bt = x_ref.shape[0]
    cin = x_ref.shape[-1]
    cout = o_ref.shape[-1]

    acc = jnp.zeros((bt * ho * wo, cout), jnp.float32)
    for t in range(ksize * ksize):          # static unroll over the k*k taps
        r = (t // ksize) * dilation
        c = (t % ksize) * dilation
        patch = x_ref[:, _tap_slice(r, ho, stride), _tap_slice(c, wo, stride), :]
        acc = acc + jnp.dot(patch.reshape(bt * ho * wo, cin), w_ref[t],
                            preferred_element_type=jnp.float32)
    o_ref[...] = acc.reshape(bt, ho, wo, cout).astype(o_ref.dtype)


def cdilated_conv(x, weight, *, stride=1, dilation=1, batch_tile=1):
    """Dilated Conv2d (bias=False), padding=((kSize-1)//2)*d.

    x: (N, Cin, H, W) NCHW, weight: (Cout, Cin, k, k) OIHW. Returns NCHW output.
    """
    n, cin, h, w = x.shape
    cout, cin_w, kh, kw = weight.shape
    assert cin == cin_w and kh == kw, "square kernel, matching channels expected"
    ksize = kh
    pad = ((ksize - 1) // 2) * dilation
    ho = (h + 2 * pad - dilation * (ksize - 1) - 1) // stride + 1
    wo = (w + 2 * pad - dilation * (ksize - 1) - 1) // stride + 1
    hp, wp = h + 2 * pad, w + 2 * pad

    if n % batch_tile != 0:
        batch_tile = 1
    grid = (n // batch_tile,)

    # NHWC internal layout: channels go on the matmul contraction axis.
    x_nhwc = jnp.transpose(x, (0, 2, 3, 1))
    x_pad = jnp.pad(x_nhwc, ((0, 0), (pad, pad), (pad, pad), (0, 0)))
    # (k*k, Cin, Cout): a ready-to-use matmul RHS per tap, kept VMEM-resident.
    w_taps = jnp.transpose(weight, (2, 3, 1, 0)).reshape(ksize * ksize, cin, cout)

    kernel = functools.partial(
        _dilated_conv_kernel,
        ksize=ksize, dilation=dilation, stride=stride, ho=ho, wo=wo)

    out_nhwc = pl.pallas_call(
        kernel,
        out_shape=jax.ShapeDtypeStruct((n, ho, wo, cout), x.dtype),
        grid_spec=pltpu.PrefetchScalarGridSpec(
            num_scalar_prefetch=0,
            grid=grid,
            in_specs=[
                pl.BlockSpec((batch_tile, hp, wp, cin), lambda b: (b, 0, 0, 0)),
                pl.BlockSpec((ksize * ksize, cin, cout), lambda b: (0, 0, 0)),
            ],
            out_specs=pl.BlockSpec((batch_tile, ho, wo, cout),
                                   lambda b: (b, 0, 0, 0)),
        ),
        compiler_params=pltpu.CompilerParams(
            dimension_semantics=("parallel",)),
    )(x_pad, w_taps)

    return jnp.transpose(out_nhwc, (0, 3, 1, 2))


class CDilated:
    """JAX/Pallas equivalent of the PyTorch CDilated module (Conv2d, bias=False)."""

    def __init__(self, nIn, nOut, kSize, stride=1, d=1, *, key, dtype=jnp.float32):
        self.stride = stride
        self.dilation = d
        fan_in = nIn * kSize * kSize
        self.weight = jax.random.normal(key, (nOut, nIn, kSize, kSize), dtype) * (
            fan_in ** -0.5)

    def __call__(self, x):
        return cdilated_conv(x, self.weight, stride=self.stride,
                             dilation=self.dilation)


def _reference(x, weight, stride, dilation):
    ksize = weight.shape[-1]
    pad = ((ksize - 1) // 2) * dilation
    return lax.conv_general_dilated(
        x, weight,
        window_strides=(stride, stride),
        padding=((pad, pad), (pad, pad)),
        rhs_dilation=(dilation, dilation),
        dimension_numbers=("NCHW", "OIHW", "NCHW"),
    )


if __name__ == "__main__":
    key = jax.random.PRNGKey(0)
    kx, kw1, kw2 = jax.random.split(key, 3)

    n, cin, h, w = 2, 4, 16, 16
    cout, ksize = 8, 3
    x = jax.random.normal(kx, (n, cin, h, w), dtype=jnp.float32)

    # Dilated conv (d=2), the typical CDilated configuration in the ESP blocks.
    m2 = CDilated(cin, cout, ksize, stride=1, d=2, key=kw1)
    out2 = jax.block_until_ready(m2(x))
    ref2 = _reference(x, m2.weight, stride=1, dilation=2)
    assert out2.shape == ref2.shape == (n, cout, h, w), out2.shape
    assert jnp.allclose(out2, ref2, atol=1e-4, rtol=1e-4), "d=2 mismatch vs reference"

    # Plain conv (d=1) sanity check through the same kernel.
    m1 = CDilated(cin, cout, ksize, stride=1, d=1, key=kw2)
    out1 = jax.block_until_ready(m1(x))
    ref1 = _reference(x, m1.weight, stride=1, dilation=1)
    assert out1.shape == ref1.shape == (n, cout, h, w), out1.shape
    assert jnp.allclose(out1, ref1, atol=1e-4, rtol=1e-4), "d=1 mismatch vs reference"

    print("KERNEL_OK")
</pallas_src>

<mosaic_0001>
module attributes {stable_mosaic.version = 11 : i64} {
  func.func @_dilated_conv_kernel(%arg0: i32, %arg1: memref<1x20x20x4xf32, #tpu.memory_space<vmem>>, %arg2: memref<9x4x8xf32, #tpu.memory_space<vmem>>, %arg3: memref<1x16x16x8xf32, #tpu.memory_space<vmem>>) attributes {dimension_semantics = [#tpu.dimension_semantics<parallel>], iteration_bounds = array<i64: 2>, scalar_prefetch = 0 : i64, scratch_operands = 0 : i64, tpu.core_type = #tpu.core_type<tc>, window_params = [{transform_indices = @transform_0, window_bounds = array<i64: 1, 20, 20, 4>}, {pipeline_mode = #tpu.pipeline_mode<synchronous>, transform_indices = @transform_1, window_bounds = array<i64: 9, 4, 8>}, {transform_indices = @transform_2, window_bounds = array<i64: 1, 16, 16, 8>}]} {
    %cst = arith.constant 0.000000e+00 : f32
    %0 = vector.broadcast %cst : f32 to vector<256x8xf32>
    %c0 = arith.constant 0 : index
    %c0_0 = arith.constant 0 : index
    %c0_1 = arith.constant 0 : index
    %c0_2 = arith.constant 0 : index
    %1 = vector.load %arg1[%c0, %c0_0, %c0_1, %c0_2] : memref<1x20x20x4xf32, #tpu.memory_space<vmem>>, vector<1x16x16x4xf32>
    %2 = vector.shape_cast %1 : vector<1x16x16x4xf32> to vector<256x4xf32>
    %c0_3 = arith.constant 0 : index
    %c0_4 = arith.constant 0 : index
    %c0_5 = arith.constant 0 : index
    %3 = vector.load %arg2[%c0_3, %c0_4, %c0_5] : memref<9x4x8xf32, #tpu.memory_space<vmem>>, vector<1x4x8xf32>
    %4 = vector.shape_cast %3 : vector<1x4x8xf32> to vector<4x8xf32>
    %cst_6 = arith.constant dense<0.000000e+00> : vector<256x8xf32>
    %5 = tpu.matmul %2, %4, %cst_6 {dimension_numbers = #tpu.dot_dimension_numbers<[1], [0], [0], [1], [0, 0, 1, 1], [], []>} : vector<256x4xf32>, vector<4x8xf32>, vector<256x8xf32> -> vector<256x8xf32>
    %6 = arith.addf %0, %5 : vector<256x8xf32>
    %c0_7 = arith.constant 0 : index
    %c0_8 = arith.constant 0 : index
    %c2 = arith.constant 2 : index
    %c0_9 = arith.constant 0 : index
    %7 = vector.load %arg1[%c0_7, %c0_8, %c2, %c0_9] : memref<1x20x20x4xf32, #tpu.memory_space<vmem>>, vector<1x16x16x4xf32>
    %8 = vector.shape_cast %7 : vector<1x16x16x4xf32> to vector<256x4xf32>
    %c1 = arith.constant 1 : index
    %c0_10 = arith.constant 0 : index
    %c0_11 = arith.constant 0 : index
    %9 = vector.load %arg2[%c1, %c0_10, %c0_11] : memref<9x4x8xf32, #tpu.memory_space<vmem>>, vector<1x4x8xf32>
    %10 = vector.shape_cast %9 : vector<1x4x8xf32> to vector<4x8xf32>
    %cst_12 = arith.constant dense<0.000000e+00> : vector<256x8xf32>
    %11 = tpu.matmul %8, %10, %cst_12 {dimension_numbers = #tpu.dot_dimension_numbers<[1], [0], [0], [1], [0, 0, 1, 1], [], []>} : vector<256x4xf32>, vector<4x8xf32>, vector<256x8xf32> -> vector<256x8xf32>
    %12 = arith.addf %6, %11 : vector<256x8xf32>
    %c0_13 = arith.constant 0 : index
    %c0_14 = arith.constant 0 : index
    %c4 = arith.constant 4 : index
    %c0_15 = arith.constant 0 : index
    %13 = vector.load %arg1[%c0_13, %c0_14, %c4, %c0_15] : memref<1x20x20x4xf32, #tpu.memory_space<vmem>>, vector<1x16x16x4xf32>
    %14 = vector.shape_cast %13 : vector<1x16x16x4xf32> to vector<256x4xf32>
    %c2_16 = arith.constant 2 : index
    %c0_17 = arith.constant 0 : index
    %c0_18 = arith.constant 0 : index
    %15 = vector.load %arg2[%c2_16, %c0_17, %c0_18] : memref<9x4x8xf32, #tpu.memory_space<vmem>>, vector<1x4x8xf32>
    %16 = vector.shape_cast %15 : vector<1x4x8xf32> to vector<4x8xf32>
    %cst_19 = arith.constant dense<0.000000e+00> : vector<256x8xf32>
    %17 = tpu.matmul %14, %16, %cst_19 {dimension_numbers = #tpu.dot_dimension_numbers<[1], [0], [0], [1], [0, 0, 1, 1], [], []>} : vector<256x4xf32>, vector<4x8xf32>, vector<256x8xf32> -> vector<256x8xf32>
    %18 = arith.addf %12, %17 : vector<256x8xf32>
    %c0_20 = arith.constant 0 : index
    %c2_21 = arith.constant 2 : index
    %c0_22 = arith.constant 0 : index
    %c0_23 = arith.constant 0 : index
    %19 = vector.load %arg1[%c0_20, %c2_21, %c0_22, %c0_23] : memref<1x20x20x4xf32, #tpu.memory_space<vmem>>, vector<1x16x16x4xf32>
    %20 = vector.shape_cast %19 : vector<1x16x16x4xf32> to vector<256x4xf32>
    %c3 = arith.constant 3 : index
    %c0_24 = arith.constant 0 : index
    %c0_25 = arith.constant 0 : index
    %21 = vector.load %arg2[%c3, %c0_24, %c0_25] : memref<9x4x8xf32, #tpu.memory_space<vmem>>, vector<1x4x8xf32>
    %22 = vector.shape_cast %21 : vector<1x4x8xf32> to vector<4x8xf32>
    %cst_26 = arith.constant dense<0.000000e+00> : vector<256x8xf32>
    %23 = tpu.matmul %20, %22, %cst_26 {dimension_numbers = #tpu.dot_dimension_numbers<[1], [0], [0], [1], [0, 0, 1, 1], [], []>} : vector<256x4xf32>, vector<4x8xf32>, vector<256x8xf32> -> vector<256x8xf32>
    %24 = arith.addf %18, %23 : vector<256x8xf32>
    %c0_27 = arith.constant 0 : index
    %c2_28 = arith.constant 2 : index
    %c2_29 = arith.constant 2 : index
    %c0_30 = arith.constant 0 : index
    %25 = vector.load %arg1[%c0_27, %c2_28, %c2_29, %c0_30] : memref<1x20x20x4xf32, #tpu.memory_space<vmem>>, vector<1x16x16x4xf32>
    %26 = vector.shape_cast %25 : vector<1x16x16x4xf32> to vector<256x4xf32>
    %c4_31 = arith.constant 4 : index
    %c0_32 = arith.constant 0 : index
    %c0_33 = arith.constant 0 : index
    %27 = vector.load %arg2[%c4_31, %c0_32, %c0_33] : memref<9x4x8xf32, #tpu.memory_space<vmem>>, vector<1x4x8xf32>
    %28 = vector.shape_cast %27 : vector<1x4x8xf32> to vector<4x8xf32>
    %cst_34 = arith.constant dense<0.000000e+00> : vector<256x8xf32>
    %29 = tpu.matmul %26, %28, %cst_34 {dimension_numbers = #tpu.dot_dimension_numbers<[1], [0], [0], [1], [0, 0, 1, 1], [], []>} : vector<256x4xf32>, vector<4x8xf32>, vector<256x8xf32> -> vector<256x8xf32>
    %30 = arith.addf %24, %29 : vector<256x8xf32>
    %c0_35 = arith.constant 0 : index
    %c2_36 = arith.constant 2 : index
    %c4_37 = arith.constant 4 : index
    %c0_38 = arith.constant 0 : index
    %31 = vector.load %arg1[%c0_35, %c2_36, %c4_37, %c0_38] : memref<1x20x20x4xf32, #tpu.memory_space<vmem>>, vector<1x16x16x4xf32>
    %32 = vector.shape_cast %31 : vector<1x16x16x4xf32> to vector<256x4xf32>
    %c5 = arith.constant 5 : index
    %c0_39 = arith.constant 0 : index
    %c0_40 = arith.constant 0 : index
    %33 = vector.load %arg2[%c5, %c0_39, %c0_40] : memref<9x4x8xf32, #tpu.memory_space<vmem>>, vector<1x4x8xf32>
    %34 = vector.shape_cast %33 : vector<1x4x8xf32> to vector<4x8xf32>
    %cst_41 = arith.constant dense<0.000000e+00> : vector<256x8xf32>
    %35 = tpu.matmul %32, %34, %cst_41 {dimension_numbers = #tpu.dot_dimension_numbers<[1], [0], [0], [1], [0, 0, 1, 1], [], []>} : vector<256x4xf32>, vector<4x8xf32>, vector<256x8xf32> -> vector<256x8xf32>
    %36 = arith.addf %30, %35 : vector<256x8xf32>
    %c0_42 = arith.constant 0 : index
    %c4_43 = arith.constant 4 : index
    %c0_44 = arith.constant 0 : index
    %c0_45 = arith.constant 0 : index
    %37 = vector.load %arg1[%c0_42, %c4_43, %c0_44, %c0_45] : memref<1x20x20x4xf32, #tpu.memory_space<vmem>>, vector<1x16x16x4xf32>
    %38 = vector.shape_cast %37 : vector<1x16x16x4xf32> to vector<256x4xf32>
    %c6 = arith.constant 6 : index
    %c0_46 = arith.constant 0 : index
    %c0_47 = arith.constant 0 : index
    %39 = vector.load %arg2[%c6, %c0_46, %c0_47] : memref<9x4x8xf32, #tpu.memory_space<vmem>>, vector<1x4x8xf32>
    %40 = vector.shape_cast %39 : vector<1x4x8xf32> to vector<4x8xf32>
    %cst_48 = arith.constant dense<0.000000e+00> : vector<256x8xf32>
    %41 = tpu.matmul %38, %40, %cst_48 {dimension_numbers = #tpu.dot_dimension_numbers<[1], [0], [0], [1], [0, 0, 1, 1], [], []>} : vector<256x4xf32>, vector<4x8xf32>, vector<256x8xf32> -> vector<256x8xf32>
    %42 = arith.addf %36, %41 : vector<256x8xf32>
    %c0_49 = arith.constant 0 : index
    %c4_50 = arith.constant 4 : index
    %c2_51 = arith.constant 2 : index
    %c0_52 = arith.constant 0 : index
    %43 = vector.load %arg1[%c0_49, %c4_50, %c2_51, %c0_52] : memref<1x20x20x4xf32, #tpu.memory_space<vmem>>, vector<1x16x16x4xf32>
    %44 = vector.shape_cast %43 : vector<1x16x16x4xf32> to vector<256x4xf32>
    %c7 = arith.constant 7 : index
    %c0_53 = arith.constant 0 : index
    %c0_54 = arith.constant 0 : index
    %45 = vector.load %arg2[%c7, %c0_53, %c0_54] : memref<9x4x8xf32, #tpu.memory_space<vmem>>, vector<1x4x8xf32>
    %46 = vector.shape_cast %45 : vector<1x4x8xf32> to vector<4x8xf32>
    %cst_55 = arith.constant dense<0.000000e+00> : vector<256x8xf32>
    %47 = tpu.matmul %44, %46, %cst_55 {dimension_numbers = #tpu.dot_dimension_numbers<[1], [0], [0], [1], [0, 0, 1, 1], [], []>} : vector<256x4xf32>, vector<4x8xf32>, vector<256x8xf32> -> vector<256x8xf32>
    %48 = arith.addf %42, %47 : vector<256x8xf32>
    %c0_56 = arith.constant 0 : index
    %c4_57 = arith.constant 4 : index
    %c4_58 = arith.constant 4 : index
    %c0_59 = arith.constant 0 : index
    %49 = vector.load %arg1[%c0_56, %c4_57, %c4_58, %c0_59] : memref<1x20x20x4xf32, #tpu.memory_space<vmem>>, vector<1x16x16x4xf32>
    %50 = vector.shape_cast %49 : vector<1x16x16x4xf32> to vector<256x4xf32>
    %c8 = arith.constant 8 : index
    %c0_60 = arith.constant 0 : index
    %c0_61 = arith.constant 0 : index
    %51 = vector.load %arg2[%c8, %c0_60, %c0_61] : memref<9x4x8xf32, #tpu.memory_space<vmem>>, vector<1x4x8xf32>
    %52 = vector.shape_cast %51 : vector<1x4x8xf32> to vector<4x8xf32>
    %cst_62 = arith.constant dense<0.000000e+00> : vector<256x8xf32>
    %53 = tpu.matmul %50, %52, %cst_62 {dimension_numbers = #tpu.dot_dimension_numbers<[1], [0], [0], [1], [0, 0, 1, 1], [], []>} : vector<256x4xf32>, vector<4x8xf32>, vector<256x8xf32> -> vector<256x8xf32>
    %54 = arith.addf %48, %53 : vector<256x8xf32>
    %55 = vector.shape_cast %54 : vector<256x8xf32> to vector<1x16x16x8xf32>
    %c0_63 = arith.constant 0 : index
    %c0_64 = arith.constant 0 : index
    %c0_65 = arith.constant 0 : index
    %c0_66 = arith.constant 0 : index
    %56 = vector.load %arg3[%c0_63, %c0_64, %c0_65, %c0_66] : memref<1x16x16x8xf32, #tpu.memory_space<vmem>>, vector<1x16x16x8xf32>
    tpu.vector_store %arg3[%c0_63, %c0_64, %c0_65, %c0_66], %55 {strides = array<i32>} : memref<1x16x16x8xf32, #tpu.memory_space<vmem>>, vector<1x16x16x8xf32>,
    return
  }
  func.func @transform_0(%arg0: i32) -> (i32, i32, i32, i32) {
    %c0_i32 = arith.constant 0 : i32
    %c0_i32_0 = arith.constant 0 : i32
    %c0_i32_1 = arith.constant 0 : i32
    %c0_i32_2 = arith.constant 0 : i32
    return %arg0, %c0_i32, %c0_i32_0, %c0_i32_1 : i32, i32, i32, i32
  }
  func.func @transform_1(%arg0: i32) -> (i32, i32, i32) {
    %c0_i32 = arith.constant 0 : i32
    %c0_i32_0 = arith.constant 0 : i32
    %c0_i32_1 = arith.constant 0 : i32
    %c0_i32_2 = arith.constant 0 : i32
    return %c0_i32, %c0_i32_0, %c0_i32_1 : i32, i32, i32
  }
  func.func @transform_2(%arg0: i32) -> (i32, i32, i32, i32) {
    %c0_i32 = arith.constant 0 : i32
    %c0_i32_0 = arith.constant 0 : i32
    %c0_i32_1 = arith.constant 0 : i32
    %c0_i32_2 = arith.constant 0 : i32
    return %arg0, %c0_i32, %c0_i32_0, %c0_i32_1 : i32, i32, i32, i32
  }
}

</mosaic_0001>

<bundles_post_ra>
// kernel: tpu_custom_call.1
= control target key start
LH: loop header
LB: loop body
LE: loop exit
PB: predicated region body
PF: predicated region fallthrough
CT: control target
= control target key end

     0   :  { %s5226_s9 = smov 0   ;;  %s6232_s0 = inlined_call_operand.vmem [shape: f32[2,20,20,4], index: 0, kind: input, shape index: {}]   ;;  %s6233_s1 = inlined_call_operand.vmem [shape: f32[9,4,8], index: 1, kind: input, shape index: {}]   ;;  %s6234_s2 = inlined_call_operand.vmem [shape: f32[2,16,16,8], index: 2, kind: output, shape index: {}]  }
   0x1 LB: > { %s3681_s10 = sadd.s32 4294967295, %s5209_s9   ;;  %p3685_p0 = scmp.ge.s32.totalorder %s5209_s9, 1  ;;  %s5209_s9 = sphi %s5226_s9, %s12_s9  }
   0x2   : > { %p112_p1 = scmp.lt.s32.totalorder %s5209_s9, 3 }
   0x4   : > { %p113_p2 = pnand %p3685_p0, %p112_p1 }
   0x6   : > { %116 = sbr.rel (%p113_p2) target bundleno = 521 (0x209), region = 28 }
   0xd   : > { %v3689_v0 = vld [vmem:[%s6233_s1 + $0x4] sm:$0xf]  ;;  %vm308_vm0 = vcmask 1043456   ;;  %v5240_v1 = vld [vmem:[%s6233_s1 + $0x10] sm:$0xf]  ;;  %p134_p3 = scmp.lt.s32.totalorder %s3681_s10, 1 }
   0xe   : > { %4486 = vmatprep.subr.msk.mxu1 %vm308_vm0, %v3689_v0  ;;  %4686 = vmatprep.subr.msk.mxu0 %vm308_vm0, %v5240_v1  ;;  %v176_v2 = vld [vmem:[%s6233_s1] sm:$0xf]  ;;  %v3954_v3 = vld [vmem:[%s6233_s1 + $0x14] sm:$0xf]  ;;  %vm211_vm1 = vcmask 31744   ;;  %vm3593_vm2 = vcmask 64512  }
   0xf   : > { %4487 = vmatpush3.msk.msra.mxu1 %vm308_vm0, %v3689_v0  ;;  %4687 = vmatpush3.msk.msra.mxu0 %vm308_vm0, %v5240_v1  ;;  %s6323_s10 = smov (!%p134_p3, %s3681_s10), 1  ;;  %v4020_v10 = vld [vmem:[%s6233_s1 + $0x18] sm:$0xf]  ;;  %v5280_v11 = vld [vmem:[%s6233_s1 + $0x8] sm:$0xf] }
  0x10   : > { %4536 = vmatprep.subr.msk.mxu1 %vm308_vm0, %v176_v2  ;;  %4736 = vmatprep.subr.msk.mxu0 %vm308_vm0, %v3954_v3  ;;  %s5194_s19 = smul.u32 480, %s6323_s10  ;;  %v5389_v29 = vld [vmem:[%s6233_s1 + $0x1c] sm:$0xf]  ;;  %v5547_v61 = vld [vmem:[%s6233_s1 + $0xc] sm:$0xf]  ;;  %s4188_s5 = sshll.u32 %s6323_s10, 8 }
  0x11   : > { %s6163_s8 = scalar_lea.vmem %s6234_s2, %s4188_s5 }
  0x12   : > { %s5262_s22 = scalar_lea.vmem %s6232_s0, %s5194_s19 }
  0x13   : > { %v177_v4 = vld [vmem:[%s5262_s22 + $0x2] sm:$0xff]  ;;  %v3856_v5 = vld [vmem:[%s5262_s22 + $0x32] sm:$0xff]  ;;  %v178_v6 = vld [vmem:[%s5262_s22 + $0xa] sm:$0xff] }
  0x14   : > { %4488 = vmatprep.mubr.msk.f32.mxu1 %vm211_vm1, %v177_v4  ;;  %4688 = vmatprep.mubr.msk.f32.mxu0 %vm211_vm1, %v3856_v5  ;;  %v3857_v7 = vld [vmem:[%s5262_s22 + $0x3a] sm:$0xff]  ;;  %v3858_v9 = vld [vmem:[%s5262_s22 + $0x4a] sm:$0xff]  ;;  %v180_v12 = vld [vmem:[%s5262_s22 + $0x22] sm:$0xff] }
  0x15   : > { %v179_v8 = vld [vmem:[%s5262_s22 + $0x1a] sm:$0xff]  ;;  %4489 = vmatmul.mubr.msk.f32.vlgmr.msra.gmra.mrb[0].mxu1 %vm211_vm1, %v178_v6  ;;  %4689 = vmatmul.mubr.msk.f32.vlgmr.msra.gmra.mrb[0].mxu0 %vm211_vm1, %v3857_v7  ;;  %v3859_v13 = vld [vmem:[%s5262_s22 + $0x52] sm:$0xff]  ;;  %v5289_v14 = vld [vmem:[%s5262_s22 + $0x62] sm:$0xff] }
  0x16   : > { %4537 = vmatpush3.msk.msra.mxu1 %vm308_vm0, %v176_v2  ;;  %4737 = vmatpush3.msk.msra.mxu0 %vm308_vm0, %v3954_v3  ;;  %v5300_v15 = vld [vmem:[%s5262_s22 + $0x6a] sm:$0xff]  ;;  %v5303_v16 = vld [vmem:[%s5262_s22 + $0x7a] sm:$0xff]  ;;  %v5312_v17 = vld [vmem:[%s5262_s22 + $0x82] sm:$0xff] }
  0x17   : > { %4491 = vmatprep.mubr.msk.f32.mxu1 %vm211_vm1, %v179_v8  ;;  %4691 = vmatprep.mubr.msk.f32.mxu0 %vm211_vm1, %v3858_v9  ;;  %v5315_v18 = vld [vmem:[%s5262_s22 + $0x92] sm:$0xff]  ;;  %v5325_v19 = vld [vmem:[%s5262_s22 + $0x9a] sm:$0xff]  ;;  %v5328_v20 = vld [vmem:[%s5262_s22 + $0xaa] sm:$0xff] }
  0x18   : > { %4786 = vmatprep.subr.msk.mxu0 %vm308_vm0, %v4020_v10  ;;  %4586 = vmatprep.subr.msk.mxu1 %vm308_vm0, %v5280_v11  ;;  %v5339_v21 = vld [vmem:[%s5262_s22 + $0xb2] sm:$0xff]  ;;  %v5342_v22 = vld [vmem:[%s5262_s22 + $0xc2] sm:$0xff]  ;;  %v5353_v23 = vld [vmem:[%s5262_s22 + $0xca] sm:$0xff] }
  0x19   : > { %4492 = vmatmul.mubr.msk.f32.gmra.mrb[2].mxu1 %vm211_vm1, %v180_v12  ;;  %4692 = vmatmul.mubr.msk.f32.gmra.mrb[2].mxu0 %vm211_vm1, %v3859_v13  ;;  %v5356_v24 = vld [vmem:[%s5262_s22 + $0xda] sm:$0xff]  ;;  %v5367_v25 = vld [vmem:[%s5262_s22 + $0xe2] sm:$0xff]  ;;  %v5384_v28 = vld [vmem:[%s5262_s22 + $0x4c] sm:$0xff] }
  0x1a   : > { %4494 = vmatprep.mubr.msk.f32.mxu1 %vm211_vm1, %v3856_v5  ;;  %4694 = vmatprep.mubr.msk.f32.mxu0 %vm211_vm1, %v5289_v14  ;;  %v5370_v26 = vld [vmem:[%s5262_s22 + $0x34] sm:$0xff]  ;;  %v5381_v27 = vld [vmem:[%s5262_s22 + $0x3c] sm:$0xff]  ;;  %v5407_v32 = vld [vmem:[%s5262_s22 + $0x64] sm:$0xff] }
  0x1b   : > { %v5399_v30 = vld [vmem:[%s5262_s22 + $0x54] sm:$0xff]  ;;  %v5423_v34 = vld [vmem:[%s5262_s22 + $0x6c] sm:$0xff]  ;;  %v5429_v36 = vld [vmem:[%s5262_s22 + $0x7c] sm:$0xff] }
  0x1c   : > { %v5404_v31 = vld [vmem:[%s5262_s22 + $0xf2] sm:$0xff]  ;;  %v5420_v33 = vld [vmem:[%s5262_s22 + $0xfa] sm:$0xff]  ;;  %v5426_v35 = vld [vmem:[%s5262_s22 + $0x10a] sm:$0xff] }
  0x1d   : > { %4495 = vmatmul.mubr.msk.f32.gmra.mrb[4].mxu1 %vm211_vm1, %v3857_v7  ;;  %4695 = vmatmul.mubr.msk.f32.gmra.mrb[4].mxu0 %vm211_vm1, %v5300_v15  ;;  %v5440_v37 = vld [vmem:[%s5262_s22 + $0x112] sm:$0xff]  ;;  %v5443_v38 = vld [vmem:[%s5262_s22 + $0x84] sm:$0xff]  ;;  %v5463_v42 = vld [vmem:[%s5262_s22 + $0x9c] sm:$0xff] }
  0x1e   : > { %4497 = vmatprep.mubr.msk.f32.mxu1 %vm211_vm1, %v3858_v9  ;;  %4697 = vmatprep.mubr.msk.f32.mxu0 %vm211_vm1, %v5303_v16  ;;  %v5446_v39 = vld [vmem:[%s5262_s22 + $0x122] sm:$0xff]  ;;  %v5449_v40 = vld [vmem:[%s5262_s22 + $0x94] sm:$0xff]  ;;  %v5460_v41 = vld [vmem:[%s5262_s22 + $0x12a] sm:$0xff] }
  0x1f   : > { %v5466_v43 = vld [vmem:[%s5262_s22 + $0x13a] sm:$0xff]  ;;  %v5469_v44 = vld [vmem:[%s5262_s22 + $0xac] sm:$0xff]  ;;  %v5480_v45 = vld [vmem:[%s5262_s22 + $0x142] sm:$0xff] }
  0x20   : > { %6268 = vst [vmem:[#allocation2_spill] sm:$0xff] %v5466_v43  ;;  %6269 = vst [vmem:[#allocation3_spill] sm:$0xff] %v5480_v45  ;;  %v5483_v46 = vld [vmem:[%s5262_s22 + $0xb4] sm:$0xff]  ;;  %v5489_v48 = vld [vmem:[%s5262_s22 + $0xc4] sm:$0xff] }
  0x21   : > { %4498 = vmatmul.mubr.msk.f32.gmra.mrb[6].mxu1 %vm211_vm1, %v3859_v13  ;;  %4698 = vmatmul.mubr.msk.f32.gmra.mrb[6].mxu0 %vm211_vm1, %v5312_v17  ;;  %v5486_v47 = vld [vmem:[%s5262_s22 + $0x152] sm:$0xff]  ;;  %v5500_v49 = vld [vmem:[%s5262_s22 + $0x15a] sm:$0xff]  ;;  %v5506_v51 = vld [vmem:[%s5262_s22 + $0x16a] sm:$0xff] }
  0x22   : > { %4500 = vmatprep.mubr.msk.f32.mxu1 %vm211_vm1, %v5289_v14  ;;  %4700 = vmatprep.mubr.msk.f32.mxu0 %vm211_vm1, %v5315_v18  ;;  %6270 = vst [vmem:[#allocation4_spill] sm:$0xff] %v5486_v47  ;;  %6271 = vst [vmem:[#allocation5_spill] sm:$0xff] %v5500_v49  ;;  %v5503_v50 = vld [vmem:[%s5262_s22 + $0xcc] sm:$0xff]  ;;  %v5509_v52 = vld [vmem:[%s5262_s22 + $0xdc] sm:$0xff] }
  0x23   : > { %6272 = vst [vmem:[#allocation6_spill] sm:$0xff] %v5506_v51  ;;  %v5520_v53 = vld [vmem:[%s5262_s22 + $0x172] sm:$0xff]  ;;  %v5523_v54 = vld [vmem:[%s5262_s22 + $0xe4] sm:$0xff]  ;;  %v5538_v58 = vld [vmem:[%s5262_s22 + $0xfc] sm:$0xff] }
  0x24   : > { %6273 = vst [vmem:[#allocation7_spill] sm:$0xff] %v5520_v53  ;;  %v144_v55 = vld [vmem:[%s5262_s22] sm:$0xff]  ;;  %v5527_v56 = vld [vmem:[%s5262_s22 + $0xf4] sm:$0xff]  ;;  %v145_v57 = vld [vmem:[%s5262_s22 + $0x8] sm:$0xff] }
  0x25   : > { %4501 = vmatmul.mubr.msk.f32.gmra.mrb[8].mxu1 %vm211_vm1, %v5300_v15  ;;  %4701 = vmatmul.mubr.msk.f32.gmra.mrb[8].mxu0 %vm211_vm1, %v5325_v19  ;;  %v146_v59 = vld [vmem:[%s5262_s22 + $0x18] sm:$0xff]  ;;  %v5542_v60 = vld [vmem:[%s5262_s22 + $0x10c] sm:$0xff]  ;;  %v147_v62 = vld [vmem:[%s5262_s22 + $0x20] sm:$0xff] }
  0x26   : > { %4503 = vmatprep.mubr.msk.f32.mxu1 %vm211_vm1, %v5303_v16  ;;  %4703 = vmatprep.mubr.msk.f32.mxu0 %vm211_vm1, %v5328_v20  ;;  %v5557_v63 = vld [vmem:[%s5262_s22 + $0x114] sm:$0xff]  ;;  %v5565_v2 = vld [vmem:[%s5262_s22 + $0x124] sm:$0xff]  ;;  %v5580_v4 = vld [vmem:[%s5262_s22 + $0x12c] sm:$0xff] }
  0x27   : > { %v5562_v0 = vld [vmem:[%s5262_s22 + $0x30] sm:$0xff]  ;;  %v5577_v3 = vld [vmem:[%s5262_s22 + $0x38] sm:$0xff]  ;;  %v5583_v5 = vld [vmem:[%s5262_s22 + $0x48] sm:$0xff] }
  0x28   : > { %6274 = vst [vmem:[#allocation8_spill] sm:$0xff] %v5583_v5  ;;  %v5586_v6 = vld [vmem:[%s5262_s22 + $0x13c] sm:$0xff]  ;;  %v5597_v7 = vld [vmem:[%s5262_s22 + $0x50] sm:$0xff]  ;;  %v5600_v8 = vld [vmem:[%s5262_s22 + $0x144] sm:$0xff] }
  0x29   : > { %4504 = vmatmul.mubr.msk.f32.gmra.mrb[10].mxu1 %vm211_vm1, %v5312_v17  ;;  %4704 = vmatmul.mubr.msk.f32.gmra.mrb[10].mxu0 %vm211_vm1, %v5339_v21  ;;  %6275 = vst [vmem:[#allocation9_spill] sm:$0xff] %v5597_v7  ;;  %v5603_v9 = vld [vmem:[%s5262_s22 + $0x60] sm:$0xff]  ;;  %v5623_v13 = vld [vmem:[%s5262_s22 + $0x78] sm:$0xff] }
  0x2a   : > { %4506 = vmatprep.mubr.msk.f32.mxu1 %vm211_vm1, %v5315_v18  ;;  %4706 = vmatprep.mubr.msk.f32.mxu0 %vm211_vm1, %v5342_v22  ;;  %6276 = vst [vmem:[#allocation10_spill] sm:$0xff] %v5603_v9  ;;  %v5620_v12 = vld [vmem:[%s5262_s22 + $0x15c] sm:$0xff]  ;;  %6278 = vst [vmem:[#allocation12_spill] sm:$0xff] %v5623_v13 }
  0x2d   : > { %4507 = vmatmul.mubr.msk.f32.gmra.mrb[12].mxu1 %vm211_vm1, %v5325_v19  ;;  %4707 = vmatmul.mubr.msk.f32.gmra.mrb[12].mxu0 %vm211_vm1, %v5353_v23 }
  0x2e   : > { %4509 = vmatprep.mubr.msk.f32.mxu1 %vm211_vm1, %v5328_v20  ;;  %4709 = vmatprep.mubr.msk.f32.mxu0 %vm211_vm1, %v5356_v24 }
  0x31   : > { %4510 = vmatmul.mubr.msk.f32.gmra.mrb[14].mxu1 %vm211_vm1, %v5339_v21  ;;  %4710 = vmatmul.mubr.msk.f32.gmra.mrb[14].mxu0 %vm211_vm1, %v5367_v25 }
  0x32   : > { %4512 = vmatprep.mubr.msk.f32.mxu1 %vm211_vm1, %v5342_v22  ;;  %4738 = vmatprep.mubr.msk.f32.mxu0 %vm211_vm1, %v5370_v26 }
  0x35   : > { %4513 = vmatmul.mubr.msk.f32.gmra.mrb[16].mxu1 %vm211_vm1, %v5353_v23  ;;  %4739 = vmatmul.mubr.msk.f32.vlgmr.msra.gmra.mrb[0].mxu0 %vm211_vm1, %v5381_v27 }
  0x36   : > { %4787 = vmatpush3.msk.msra.mxu0 %vm308_vm0, %v4020_v10  ;;  %4515 = vmatprep.mubr.msk.f32.mxu1 %vm211_vm1, %v5356_v24  ;;  %v5606_v10 = vld [vmem:[%s5262_s22 + $0x154] sm:$0xff] }
  0x37   : > { %4741 = vmatprep.mubr.msk.f32.mxu0 %vm211_vm1, %v5384_v28  ;;  %4836 = vmatprep.subr.msk.mxu0 %vm308_vm0, %v5389_v29 }
  0x39   : > { %4516 = vmatmul.mubr.msk.f32.gmra.mrb[18].mxu1 %vm211_vm1, %v5367_v25  ;;  %4742 = vmatmul.mubr.msk.f32.gmra.mrb[2].mxu0 %vm211_vm1, %v5399_v30 }
  0x3a   : > { %4518 = vmatprep.mubr.msk.f32.mxu1 %vm211_vm1, %v5404_v31  ;;  %4744 = vmatprep.mubr.msk.f32.mxu0 %vm211_vm1, %v5407_v32 }
  0x3d   : > { %4519 = vmatmul.mubr.msk.f32.gmra.mrb[20].mxu1 %vm211_vm1, %v5420_v33  ;;  %4745 = vmatmul.mubr.msk.f32.gmra.mrb[4].mxu0 %vm211_vm1, %v5423_v34 }
  0x3e   : > { %4521 = vmatprep.mubr.msk.f32.mxu1 %vm211_vm1, %v5426_v35  ;;  %4747 = vmatprep.mubr.msk.f32.mxu0 %vm211_vm1, %v5429_v36 }
  0x41   : > { %4522 = vmatmul.mubr.msk.f32.gmra.mrb[22].mxu1 %vm211_vm1, %v5440_v37  ;;  %4748 = vmatmul.mubr.msk.f32.gmra.mrb[6].mxu0 %vm211_vm1, %v5443_v38 }
  0x42   : > { %4524 = vmatprep.mubr.msk.f32.mxu1 %vm211_vm1, %v5446_v39  ;;  %4750 = vmatprep.mubr.msk.f32.mxu0 %vm211_vm1, %v5449_v40 }
  0x45   : > { %4525 = vmatmul.mubr.msk.f32.gmra.mrb[24].mxu1 %vm211_vm1, %v5460_v41  ;;  %4751 = vmatmul.mubr.msk.f32.gmra.mrb[8].mxu0 %vm211_vm1, %v5463_v42 }
  0x46   : > { %4527 = vmatprep.mubr.msk.f32.mxu1 %vm211_vm1, %v5466_v43  ;;  %4753 = vmatprep.mubr.msk.f32.mxu0 %vm211_vm1, %v5469_v44  ;;  %v5683_v43 = vld [vmem:[%s5262_s22 + $0xc0] sm:$0xff] }
  0x47   : > { %6288 = vst [vmem:[#allocation22_spill] sm:$0xff] %v5683_v43 }
  0x49   : > { %4528 = vmatmul.mubr.msk.f32.gmra.mrb[26].mxu1 %vm211_vm1, %v5480_v45  ;;  %4754 = vmatmul.mubr.msk.f32.gmra.mrb[10].mxu0 %vm211_vm1, %v5483_v46  ;;  %v5666_v45 = vld [vmem:[%s5262_s22 + $0x19c] sm:$0xff] }
  0x4a   : > { %4530 = vmatprep.mubr.msk.f32.mxu1 %vm211_vm1, %v5486_v47  ;;  %4756 = vmatprep.mubr.msk.f32.mxu0 %vm211_vm1, %v5489_v48  ;;  %v5663_v47 = vld [vmem:[%s5262_s22 + $0xa8] sm:$0xff]  ;;  %6285 = vst [vmem:[#allocation19_spill] sm:$0xff] %v5666_v45 }
  0x4b   : > { %6284 = vst [vmem:[#allocation18_spill] sm:$0xff] %v5663_v47 }
  0x4d   : > { %4531 = vmatmul.mubr.msk.f32.gmra.mrb[28].mxu1 %vm211_vm1, %v5500_v49  ;;  %4757 = vmatmul.mubr.msk.f32.gmra.mrb[12].mxu0 %vm211_vm1, %v5503_v50  ;;  %v5660_v49 = vld [vmem:[%s5262_s22 + $0x18c] sm:$0xff] }
  0x4e   : > { %4533 = vmatprep.mubr.msk.f32.mxu1 %vm211_vm1, %v5506_v51  ;;  %4759 = vmatprep.mubr.msk.f32.mxu0 %vm211_vm1, %v5509_v52  ;;  %v5657_v51 = vld [vmem:[%s5262_s22 + $0x98] sm:$0xff]  ;;  %6283 = vst [vmem:[#allocation17_spill] sm:$0xff] %v5660_v49 }
  0x4f   : > { %6282 = vst [vmem:[#allocation16_spill] sm:$0xff] %v5657_v51 }
  0x51   : > { %4534 = vmatmul.mubr.msk.f32.gmra.mrb[30].mxu1 %vm211_vm1, %v5520_v53  ;;  %4760 = vmatmul.mubr.msk.f32.gmra.mrb[14].mxu0 %vm211_vm1, %v5523_v54  ;;  %v5646_v53 = vld [vmem:[%s5262_s22 + $0x184] sm:$0xff] }
  0x52   : > { %4538 = vmatprep.mubr.msk.f32.mxu1 %vm211_vm1, %v144_v55  ;;  %4762 = vmatprep.mubr.msk.f32.mxu0 %vm211_vm1, %v5527_v56  ;;  %v5626_v55 = vld [vmem:[%s5262_s22 + $0x16c] sm:$0xff]  ;;  %6281 = vst [vmem:[#allocation15_spill] sm:$0xff] %v5646_v53 }
  0x55   : > { %4539 = vmatmul.mubr.msk.f32.vlgmr.msra.gmra.mrb[0].mxu1 %vm211_vm1, %v145_v57  ;;  %4763 = vmatmul.mubr.msk.f32.gmra.mrb[16].mxu0 %vm211_vm1, %v5538_v58  ;;  %v5637_v57 = vld [vmem:[%s5262_s22 + $0x80] sm:$0xff] }
  0x56   : > { %4587 = vmatpush3.msk.msra.mxu1 %vm308_vm0, %v5280_v11  ;;  %4541 = vmatprep.mubr.msk.f32.mxu1 %vm211_vm1, %v146_v59  ;;  %v5617_v11 = vld [vmem:[%s5262_s22 + $0x68] sm:$0xff]  ;;  %6279 = vst [vmem:[#allocation13_spill] sm:$0xff] %v5637_v57  ;;  %v5640_v59 = vld [vmem:[%s5262_s22 + $0x174] sm:$0xff] }
  0x57   : > { %4765 = vmatprep.mubr.msk.f32.mxu0 %vm211_vm1, %v5542_v60  ;;  %4636 = vmatprep.subr.msk.mxu1 %vm308_vm0, %v5547_v61  ;;  %6277 = vst [vmem:[#allocation11_spill] sm:$0xff] %v5617_v11 }
  0x59   : > { %4542 = vmatmul.mubr.msk.f32.gmra.mrb[2].mxu1 %vm211_vm1, %v147_v62  ;;  %4766 = vmatmul.mubr.msk.f32.gmra.mrb[18].mxu0 %vm211_vm1, %v5557_v63  ;;  %v5643_v62 = vld [vmem:[%s5262_s22 + $0x90] sm:$0xff] }
  0x5a   : > { %4544 = vmatprep.mubr.msk.f32.mxu1 %vm211_vm1, %v5562_v0  ;;  %4768 = vmatprep.mubr.msk.f32.mxu0 %vm211_vm1, %v5565_v2  ;;  %6280 = vst [vmem:[#allocation14_spill] sm:$0xff] %v5643_v62 }
  0x5d   : > { %4545 = vmatmul.mubr.msk.f32.gmra.mrb[4].mxu1 %vm211_vm1, %v5577_v3  ;;  %4769 = vmatmul.mubr.msk.f32.gmra.mrb[20].mxu0 %vm211_vm1, %v5580_v4 }
  0x5e   : > { %4547 = vmatprep.mubr.msk.f32.mxu1 %vm211_vm1, %v5583_v5  ;;  %4771 = vmatprep.mubr.msk.f32.mxu0 %vm211_vm1, %v5586_v6  ;;  %v5702_v5 = vld [vmem:[%s6233_s1 + $0x20] sm:$0xf] }
  0x61   : > { %4548 = vmatmul.mubr.msk.f32.gmra.mrb[6].mxu1 %vm211_vm1, %v5597_v7  ;;  %4772 = vmatmul.mubr.msk.f32.gmra.mrb[22].mxu0 %vm211_vm1, %v5600_v8  ;;  %v5680_v7 = vld [vmem:[%s5262_s22 + $0x1a4] sm:$0xff] }
  0x62   : > { %4550 = vmatprep.mubr.msk.f32.mxu1 %vm211_vm1, %v5603_v9  ;;  %4774 = vmatprep.mubr.msk.f32.mxu0 %vm211_vm1, %v5606_v10  ;;  %6287 = vst [vmem:[#allocation21_spill] sm:$0xff] %v5680_v7 }
  0x65   : > { %4551 = vmatmul.mubr.msk.f32.gmra.mrb[8].mxu1 %vm211_vm1, %v5617_v11  ;;  %4775 = vmatmul.mubr.msk.f32.gmra.mrb[24].mxu0 %vm211_vm1, %v5620_v12 }
  0x66   : > { %4553 = vmatprep.mubr.msk.f32.mxu1 %vm211_vm1, %v5623_v13  ;;  %4777 = vmatprep.mubr.msk.f32.mxu0 %vm211_vm1, %v5626_v55 }
  0x69   : > { %4554 = vmatmul.mubr.msk.f32.gmra.mrb[10].mxu1 %vm211_vm1, %v5637_v57  ;;  %4778 = vmatmul.mubr.msk.f32.gmra.mrb[26].mxu0 %vm211_vm1, %v5640_v59 }
  0x6a   : > { %4556 = vmatprep.mubr.msk.f32.mxu1 %vm211_vm1, %v5643_v62  ;;  %4780 = vmatprep.mubr.msk.f32.mxu0 %vm211_vm1, %v5646_v53  ;;  %v5677_v53 = vld [vmem:[%s5262_s22 + $0xb0] sm:$0xff] }
  0x6b   : > { %6286 = vst [vmem:[#allocation20_spill] sm:$0xff] %v5677_v53 }
  0x6d   : > { %4557 = vmatmul.mubr.msk.f32.gmra.mrb[12].mxu1 %vm211_vm1, %v5657_v51  ;;  %4781 = vmatmul.mubr.msk.f32.gmra.mrb[28].mxu0 %vm211_vm1, %v5660_v49  ;;  %v5697_v49 = vld [vmem:[%s5262_s22 + $0xd8] sm:$0xff] }
  0x6e   : > { %4559 = vmatprep.mubr.msk.f32.mxu1 %vm211_vm1, %v5663_v47  ;;  %4783 = vmatprep.mubr.msk.f32.mxu0 %vm211_vm1, %v5666_v45  ;;  %v5694_v45 = vld [vmem:[%s5262_s22 + $0xc8] sm:$0xff]  ;;  %6290 = vst [vmem:[#allocation24_spill] sm:$0xff] %v5697_v49 }
  0x6f   : > { %6289 = vst [vmem:[#allocation23_spill] sm:$0xff] %v5694_v45 }
  0x71   : > { %4560 = vmatmul.mubr.msk.f32.gmra.mrb[14].mxu1 %vm211_vm1, %v5677_v53  ;;  %4784 = vmatmul.mubr.msk.f32.gmra.mrb[30].mxu0 %vm211_vm1, %v5680_v7  ;;  %v5713_v7 = vld [vmem:[%s5262_s22 + $0xe0] sm:$0xff] }
  0x72   : > { %4562 = vmatprep.mubr.msk.f32.mxu1 %vm211_vm1, %v5683_v43  ;;  %4788 = vmatprep.mubr.msk.f32.mxu0 %vm211_vm1, %v5603_v9  ;;  %6291 = vst [vmem:[#allocation25_spill] sm:$0xff] %v5713_v7  ;;  %v5718_v9 = vld [vmem:[%s5262_s22 + $0xf0] sm:$0xff] }
  0x73   : > { %6292 = vst [vmem:[#allocation26_spill] sm:$0xff] %v5718_v9 }
  0x75   : > { %4563 = vmatmul.mubr.msk.f32.gmra.mrb[16].mxu1 %vm211_vm1, %v5694_v45  ;;  %4789 = vmatmul.mubr.msk.f32.vlgmr.msra.gmra.mrb[0].mxu0 %vm211_vm1, %v5617_v11  ;;  %v863_v11 = vld [vmem:[%s5262_s22 + $0x1c] sm:$0xff] }
  0x76   : > { %4837 = vmatpush3.msk.msra.mxu0 %vm308_vm0, %v5389_v29  ;;  %4565 = vmatprep.mubr.msk.f32.mxu1 %vm211_vm1, %v5697_v49  ;;  %v5731_v29 = vld [vmem:[%s5262_s22 + $0xf8] sm:$0xff] }
  0x77   : > { %4791 = vmatprep.mubr.msk.f32.mxu0 %vm211_vm1, %v5623_v13  ;;  %4886 = vmatprep.subr.msk.mxu0 %vm308_vm0, %v5702_v5  ;;  %6293 = vst [vmem:[#allocation27_spill] sm:$0xff] %v5731_v29  ;;  %v5734_v13 = vld [vmem:[%s5262_s22 + $0x108] sm:$0xff] }
  0x78   : > { %6294 = vst [vmem:[#allocation28_spill] sm:$0xff] %v5734_v13 }
  0x79   : > { %4566 = vmatmul.mubr.msk.f32.gmra.mrb[18].mxu1 %vm211_vm1, %v5713_v7  ;;  %4792 = vmatmul.mubr.msk.f32.gmra.mrb[2].mxu0 %vm211_vm1, %v5637_v57  ;;  %v5745_v57 = vld [vmem:[%s5262_s22 + $0x110] sm:$0xff] }
  0x7a   : > { %4568 = vmatprep.mubr.msk.f32.mxu1 %vm211_vm1, %v5718_v9  ;;  %4794 = vmatprep.mubr.msk.f32.mxu0 %vm211_vm1, %v5643_v62  ;;  %v5748_v62 = vld [vmem:[%s5262_s22 + $0x120] sm:$0xff] }
  0x7d   : > { %4569 = vmatmul.mubr.msk.f32.gmra.mrb[20].mxu1 %vm211_vm1, %v5731_v29  ;;  %4795 = vmatmul.mubr.msk.f32.gmra.mrb[4].mxu0 %vm211_vm1, %v5657_v51  ;;  %v5759_v51 = vld [vmem:[%s5262_s22 + $0x128] sm:$0xff] }
  0x7e   : > { %4571 = vmatprep.mubr.msk.f32.mxu1 %vm211_vm1, %v5734_v13  ;;  %4797 = vmatprep.mubr.msk.f32.mxu0 %vm211_vm1, %v5663_v47  ;;  %v5762_v47 = vld [vmem:[%s5262_s22 + $0x138] sm:$0xff] }
  0x81   : > { %4572 = vmatmul.mubr.msk.f32.gmra.mrb[22].mxu1 %vm211_vm1, %v5745_v57  ;;  %4798 = vmatmul.mubr.msk.f32.gmra.mrb[6].mxu0 %vm211_vm1, %v5677_v53  ;;  %v5773_v53 = vld [vmem:[%s5262_s22 + $0x140] sm:$0xff] }
  0x82   : > { %4574 = vmatprep.mubr.msk.f32.mxu1 %vm211_vm1, %v5748_v62  ;;  %4800 = vmatprep.mubr.msk.f32.mxu0 %vm211_vm1, %v5683_v43  ;;  %v5776_v43 = vld [vmem:[%s5262_s22 + $0x150] sm:$0xff] }
  0x85   : > { %4575 = vmatmul.mubr.msk.f32.gmra.mrb[24].mxu1 %vm211_vm1, %v5759_v51  ;;  %4801 = vmatmul.mubr.msk.f32.gmra.mrb[8].mxu0 %vm211_vm1, %v5694_v45  ;;  %v5787_v45 = vld [vmem:[%s5262_s22 + $0x158] sm:$0xff] }
  0x86   : > { %4577 = vmatprep.mubr.msk.f32.mxu1 %vm211_vm1, %v5762_v47  ;;  %4803 = vmatprep.mubr.msk.f32.mxu0 %vm211_vm1, %v5697_v49  ;;  %v5790_v49 = vld [vmem:[%s5262_s22 + $0x168] sm:$0xff] }
  0x89   : > { %4578 = vmatmul.mubr.msk.f32.gmra.mrb[26].mxu1 %vm211_vm1, %v5773_v53  ;;  %4804 = vmatmul.mubr.msk.f32.gmra.mrb[10].mxu0 %vm211_vm1, %v5713_v7  ;;  %v5801_v7 = vld [vmem:[%s5262_s22 + $0x170] sm:$0xff] }
  0x8a   : > { %4580 = vmatprep.mubr.msk.f32.mxu1 %vm211_vm1, %v5776_v43  ;;  %4806 = vmatprep.mubr.msk.f32.mxu0 %vm211_vm1, %v5718_v9  ;;  %v861_v9 = vld [vmem:[%s5262_s22 + $0x4] sm:$0xff] }
  0x8d   : > { %4581 = vmatmul.mubr.msk.f32.gmra.mrb[28].mxu1 %vm211_vm1, %v5787_v45  ;;  %4807 = vmatmul.mubr.msk.f32.gmra.mrb[12].mxu0 %vm211_vm1, %v5731_v29  ;;  %v862_v29 = vld [vmem:[%s5262_s22 + $0xc] sm:$0xff] }
  0x8e   : > { %4583 = vmatprep.mubr.msk.f32.mxu1 %vm211_vm1, %v5790_v49  ;;  %4809 = vmatprep.mubr.msk.f32.mxu0 %vm211_vm1, %v5734_v13  ;;  %v864_v13 = vld [vmem:[%s5262_s22 + $0x24] sm:$0xff] }
  0x91   : > { %4584 = vmatmul.mubr.msk.f32.gmra.mrb[30].mxu1 %vm211_vm1, %v5801_v7  ;;  %4810 = vmatmul.mubr.msk.f32.gmra.mrb[14].mxu0 %vm211_vm1, %v5745_v57 }
  0x92   : > { %4588 = vmatprep.mubr.msk.f32.mxu1 %vm211_vm1, %v861_v9  ;;  %4812 = vmatprep.mubr.msk.f32.mxu0 %vm211_vm1, %v5748_v62  ;;  %v4017_v9 = vld [vmem:[%s5262_s22 + $0x1b8] sm:$0xff] }
  0x95   : > { %4589 = vmatmul.mubr.msk.f32.vlgmr.msra.gmra.mrb[0].mxu1 %vm211_vm1, %v862_v29  ;;  %4813 = vmatmul.mubr.msk.f32.gmra.mrb[16].mxu0 %vm211_vm1, %v5759_v51  ;;  %v6308_v29 = vld [vmem:[#allocation16_spill] sm:$0xff] }
  0x96   : > { %4637 = vmatpush3.msk.msra.mxu1 %vm308_vm0, %v5547_v61  ;;  %4591 = vmatprep.mubr.msk.f32.mxu1 %vm211_vm1, %v863_v11  ;;  %v5840_v61 = vld [vmem:[%s5262_s22 + $0x180] sm:$0xff]  ;;  %v4018_v11 = vld [vmem:[%s5262_s22 + $0x1c8] sm:$0xff] }
  0x97   : > { %4815 = vmatprep.mubr.msk.f32.mxu0 %vm211_vm1, %v5762_v47  ;;  %4936 = vmatprep.subr.msk.mxu1 %vm308_vm0, %v5240_v1 }
  0x99   : > { %4592 = vmatmul.mubr.msk.f32.gmra.mrb[2].mxu1 %vm211_vm1, %v864_v13  ;;  %4816 = vmatmul.mubr.msk.f32.gmra.mrb[18].mxu0 %vm211_vm1, %v5773_v53  ;;  %v4019_v13 = vld [vmem:[%s5262_s22 + $0x1d0] sm:$0xff] }
  0x9a   : > { %4594 = vmatprep.mubr.msk.f32.mxu1 %vm211_vm1, %v5370_v26  ;;  %4818 = vmatprep.mubr.msk.f32.mxu0 %vm211_vm1, %v5776_v43  ;;  %v5851_v26 = vld [vmem:[%s5262_s22 + $0x188] sm:$0xff] }
  0x9d   : > { %4595 = vmatmul.mubr.msk.f32.gmra.mrb[4].mxu1 %vm211_vm1, %v5381_v27  ;;  %4819 = vmatmul.mubr.msk.f32.gmra.mrb[20].mxu0 %vm211_vm1, %v5787_v45  ;;  %v5854_v27 = vld [vmem:[%s5262_s22 + $0x198] sm:$0xff] }
  0x9e   : > { %4597 = vmatprep.mubr.msk.f32.mxu1 %vm211_vm1, %v5384_v28  ;;  %4821 = vmatprep.mubr.msk.f32.mxu0 %vm211_vm1, %v5790_v49  ;;  %v5865_v28 = vld [vmem:[%s5262_s22 + $0x1a0] sm:$0xff] }
  0xa1   : > { %4598 = vmatmul.mubr.msk.f32.gmra.mrb[6].mxu1 %vm211_vm1, %v5399_v30  ;;  %4822 = vmatmul.mubr.msk.f32.gmra.mrb[22].mxu0 %vm211_vm1, %v5801_v7  ;;  %v4016_v30 = vld [vmem:[%s5262_s22 + $0x1b0] sm:$0xff] }
  0xa2   : > { %4600 = vmatprep.mubr.msk.f32.mxu1 %vm211_vm1, %v5407_v32  ;;  %4824 = vmatprep.mubr.msk.f32.mxu0 %vm211_vm1, %v5840_v61 }
  0xa5   : > { %4601 = vmatmul.mubr.msk.f32.gmra.mrb[8].mxu1 %vm211_vm1, %v5423_v34  ;;  %4825 = vmatmul.mubr.msk.f32.gmra.mrb[24].mxu0 %vm211_vm1, %v5851_v26 }
  0xa6   : > { %4603 = vmatprep.mubr.msk.f32.mxu1 %vm211_vm1, %v5429_v36  ;;  %4827 = vmatprep.mubr.msk.f32.mxu0 %vm211_vm1, %v5854_v27 }
  0xa9   : > { %4604 = vmatmul.mubr.msk.f32.gmra.mrb[10].mxu1 %vm211_vm1, %v5443_v38  ;;  %4828 = vmatmul.mubr.msk.f32.gmra.mrb[26].mxu0 %vm211_vm1, %v5865_v28 }
  0xaa   : > { %4606 = vmatprep.mubr.msk.f32.mxu1 %vm211_vm1, %v5449_v40  ;;  %4830 = vmatprep.mubr.msk.f32.mxu0 %vm211_vm1, %v4016_v30  ;;  %v6309_v30 = vld [vmem:[#allocation18_spill] sm:$0xff] }
  0xad   : > { %4607 = vmatmul.mubr.msk.f32.gmra.mrb[12].mxu1 %vm211_vm1, %v5463_v42  ;;  %4831 = vmatmul.mubr.msk.f32.gmra.mrb[28].mxu0 %vm211_vm1, %v4017_v9  ;;  %v6009_v9 = vld [vmem:[%s5262_s22 + $0x1a2] sm:$0xff] }
  0xae   : > { %4609 = vmatprep.mubr.msk.f32.mxu1 %vm211_vm1, %v5469_v44  ;;  %4833 = vmatprep.mubr.msk.f32.mxu0 %vm211_vm1, %v4018_v11  ;;  %v4082_v11 = vld [vmem:[%s5262_s22 + $0x1b2] sm:$0xff] }
  0xb1   : > { %4610 = vmatmul.mubr.msk.f32.gmra.mrb[14].mxu1 %vm211_vm1, %v5483_v46  ;;  %4834 = vmatmul.mubr.msk.f32.gmra.mrb[30].mxu0 %vm211_vm1, %v4019_v13  ;;  %v6310_v13 = vld [vmem:[#allocation20_spill] sm:$0xff] }
  0xb2   : > { %4612 = vmatprep.mubr.msk.f32.mxu1 %vm211_vm1, %v5489_v48  ;;  %4838 = vmatprep.mubr.msk.f32.mxu0 %vm211_vm1, %v5289_v14  ;;  %v6295_v14 = vld [vmem:[#allocation8_spill] sm:$0xff] }
  0xb5   : > { %4613 = vmatmul.mubr.msk.f32.gmra.mrb[16].mxu1 %vm211_vm1, %v5503_v50  ;;  %4839 = vmatmul.mubr.msk.f32.vlgmr.msra.gmra.mrb[0].mxu0 %vm211_vm1, %v5300_v15  ;;  %v6296_v15 = vld [vmem:[#allocation2_spill] sm:$0xff] }
  0xb6   : > { %4887 = vmatpush3.msk.msra.mxu0 %vm308_vm0, %v5702_v5  ;;  %4615 = vmatprep.mubr.msk.f32.mxu1 %vm211_vm1, %v5509_v52  ;;  %v5998_v5 = vld [vmem:[%s5262_s22 + $0x19a] sm:$0xff] }
  0xb7   : > { %4841 = vmatprep.mubr.msk.f32.mxu0 %vm211_vm1, %v5303_v16  ;;  %v6297_v16 = vld [vmem:[#allocation9_spill] sm:$0xff] }
  0xb9   : > { %4616 = vmatmul.mubr.msk.f32.gmra.mrb[18].mxu1 %vm211_vm1, %v5523_v54  ;;  %4842 = vmatmul.mubr.msk.f32.gmra.mrb[2].mxu0 %vm211_vm1, %v5312_v17  ;;  %v6298_v17 = vld [vmem:[#allocation3_spill] sm:$0xff] }
  0xba   : > { %4618 = vmatprep.mubr.msk.f32.mxu1 %vm211_vm1, %v5527_v56  ;;  %4844 = vmatprep.mubr.msk.f32.mxu0 %vm211_vm1, %v5315_v18  ;;  %v6299_v18 = vld [vmem:[#allocation10_spill] sm:$0xff] }
  0xbd   : > { %4619 = vmatmul.mubr.msk.f32.gmra.mrb[20].mxu1 %vm211_vm1, %v5538_v58  ;;  %4845 = vmatmul.mubr.msk.f32.gmra.mrb[4].mxu0 %vm211_vm1, %v5325_v19  ;;  %v6300_v19 = vld [vmem:[#allocation4_spill] sm:$0xff] }
  0xbe   : > { %4621 = vmatprep.mubr.msk.f32.mxu1 %vm211_vm1, %v5542_v60  ;;  %4847 = vmatprep.mubr.msk.f32.mxu0 %vm211_vm1, %v5328_v20  ;;  %v6302_v20 = vld [vmem:[#allocation5_spill] sm:$0xff] }
  0xc1   : > { %4622 = vmatmul.mubr.msk.f32.gmra.mrb[22].mxu1 %vm211_vm1, %v5557_v63  ;;  %4848 = vmatmul.mubr.msk.f32.gmra.mrb[6].mxu0 %vm211_vm1, %v5339_v21  ;;  %v6303_v21 = vld [vmem:[#allocation12_spill] sm:$0xff] }
  0xc2   : > { %4624 = vmatprep.mubr.msk.f32.mxu1 %vm211_vm1, %v5565_v2  ;;  %4850 = vmatprep.mubr.msk.f32.mxu0 %vm211_vm1, %v5342_v22  ;;  %v6304_v22 = vld [vmem:[#allocation6_spill] sm:$0xff] }
  0xc5   : > { %4625 = vmatmul.mubr.msk.f32.gmra.mrb[24].mxu1 %vm211_vm1, %v5580_v4  ;;  %4851 = vmatmul.mubr.msk.f32.gmra.mrb[8].mxu0 %vm211_vm1, %v5353_v23  ;;  %v5984_v23 = vld [vmem:[%s5262_s22 + $0x182] sm:$0xff] }
  0xc6   : > { %4627 = vmatprep.mubr.msk.f32.mxu1 %vm211_vm1, %v5586_v6  ;;  %4853 = vmatprep.mubr.msk.f32.mxu0 %vm211_vm1, %v5356_v24  ;;  %v6305_v24 = vld [vmem:[#allocation13_spill] sm:$0xff] }
  0xc9   : > { %4628 = vmatmul.mubr.msk.f32.gmra.mrb[26].mxu1 %vm211_vm1, %v5600_v8  ;;  %4854 = vmatmul.mubr.msk.f32.gmra.mrb[10].mxu0 %vm211_vm1, %v5367_v25  ;;  %v6306_v25 = vld [vmem:[#allocation7_spill] sm:$0xff] }
  0xca   : > { %4630 = vmatprep.mubr.msk.f32.mxu1 %vm211_vm1, %v5606_v10  ;;  %4856 = vmatprep.mubr.msk.f32.mxu0 %vm211_vm1, %v5404_v31 }
  0xcd   : > { %4631 = vmatmul.mubr.msk.f32.gmra.mrb[28].mxu1 %vm211_vm1, %v5620_v12  ;;  %4857 = vmatmul.mubr.msk.f32.gmra.mrb[12].mxu0 %vm211_vm1, %v5420_v33 }
  0xce   : > { %4633 = vmatprep.mubr.msk.f32.mxu1 %vm211_vm1, %v5626_v55  ;;  %4859 = vmatprep.mubr.msk.f32.mxu0 %vm211_vm1, %v5426_v35 }
  0xd1   : > { %4634 = vmatmul.mubr.msk.f32.gmra.mrb[30].mxu1 %vm211_vm1, %v5640_v59  ;;  %4860 = vmatmul.mubr.msk.f32.gmra.mrb[14].mxu0 %vm211_vm1, %v5440_v37 }
  0xd2   : > { %4638 = vmatprep.mubr.msk.f32.mxu1 %vm211_vm1, %v5562_v0  ;;  %4862 = vmatprep.mubr.msk.f32.mxu0 %vm211_vm1, %v5446_v39  ;;  %v6307_v0 = vld [vmem:[#allocation14_spill] sm:$0xff] }
  0xd5   : > { %4639 = vmatmul.mubr.msk.f32.vlgmr.msra.gmra.mrb[0].mxu1 %vm211_vm1, %v5577_v3  ;;  %4863 = vmatmul.mubr.msk.f32.gmra.mrb[16].mxu0 %vm211_vm1, %v5460_v41  ;;  %v5995_v3 = vld [vmem:[%s5262_s22 + $0x18a] sm:$0xff] }
  0xd6   : > { %4937 = vmatpush3.msk.msra.mxu1 %vm308_vm0, %v5240_v1  ;;  %4641 = vmatprep.mubr.msk.f32.mxu1 %vm211_vm1, %v6295_v14  ;;  %v6301_v1 = vld [vmem:[#allocation11_spill] sm:$0xff]  ;;  %v6311_v14 = vld [vmem:[#allocation22_spill] sm:$0xff] }
  0xd7   : > { %4865 = vmatprep.mubr.msk.f32.mxu0 %vm211_vm1, %v6296_v15 }
  0xd9   : > { %4642 = vmatmul.mubr.msk.f32.gmra.mrb[2].mxu1 %vm211_vm1, %v6297_v16  ;;  %4866 = vmatmul.mubr.msk.f32.gmra.mrb[18].mxu0 %vm211_vm1, %v6298_v17  ;;  %v4083_v16 = vld [vmem:[%s5262_s22 + $0x1ba] sm:$0xff] }
  0xda   : > { %4644 = vmatprep.mubr.msk.f32.mxu1 %vm211_vm1, %v6299_v18  ;;  %4868 = vmatprep.mubr.msk.f32.mxu0 %vm211_vm1, %v6300_v19  ;;  %v4084_v18 = vld [vmem:[%s5262_s22 + $0x1ca] sm:$0xff] }
  0xdd   : > { %4645 = vmatmul.mubr.msk.f32.gmra.mrb[4].mxu1 %vm211_vm1, %v6301_v1  ;;  %4869 = vmatmul.mubr.msk.f32.gmra.mrb[20].mxu0 %vm211_vm1, %v6302_v20  ;;  %v6312_v1 = vld [vmem:[#allocation23_spill] sm:$0xff] }
  0xde   : > { %4647 = vmatprep.mubr.msk.f32.mxu1 %vm211_vm1, %v6303_v21  ;;  %4871 = vmatprep.mubr.msk.f32.mxu0 %vm211_vm1, %v6304_v22  ;;  %v6313_v21 = vld [vmem:[#allocation24_spill] sm:$0xff] }
  0xe1   : > { %4648 = vmatmul.mubr.msk.f32.gmra.mrb[6].mxu1 %vm211_vm1, %v6305_v24  ;;  %4872 = vmatmul.mubr.msk.f32.gmra.mrb[22].mxu0 %vm211_vm1, %v6306_v25  ;;  %v4085_v24 = vld [vmem:[%s5262_s22 + $0x1d2] sm:$0xff] }
  0xe2   : > { %4650 = vmatprep.mubr.msk.f32.mxu1 %vm211_vm1, %v6307_v0  ;;  %4874 = vmatprep.mubr.msk.f32.mxu0 %vm211_vm1, %v5984_v23  ;;  %v6314_v0 = vld [vmem:[#allocation25_spill] sm:$0xff] }
  0xe5   : > { %4651 = vmatmul.mubr.msk.f32.gmra.mrb[8].mxu1 %vm211_vm1, %v6308_v29  ;;  %4875 = vmatmul.mubr.msk.f32.gmra.mrb[24].mxu0 %vm211_vm1, %v5995_v3  ;;  %v6315_v29 = vld [vmem:[#allocation26_spill] sm:$0xff] }
  0xe6   : > { %4653 = vmatprep.mubr.msk.f32.mxu1 %vm211_vm1, %v6309_v30  ;;  %4877 = vmatprep.mubr.msk.f32.mxu0 %vm211_vm1, %v5998_v5  ;;  %v6316_v30 = vld [vmem:[#allocation27_spill] sm:$0xff] }
  0xe9   : > { %4654 = vmatmul.mubr.msk.f32.gmra.mrb[10].mxu1 %vm211_vm1, %v6310_v13  ;;  %4878 = vmatmul.mubr.msk.f32.gmra.mrb[26].mxu0 %vm211_vm1, %v6009_v9 }
  0xea   : > { %4656 = vmatprep.mubr.msk.f32.mxu1 %vm211_vm1, %v6311_v14  ;;  %4880 = vmatprep.mubr.msk.f32.mxu0 %vm211_vm1, %v4082_v11  ;;  %v6317_v11 = vld [vmem:[#allocation28_spill] sm:$0xff] }
  0xed   : > { %4657 = vmatmul.mubr.msk.f32.gmra.mrb[12].mxu1 %vm211_vm1, %v6312_v1  ;;  %4881 = vmatmul.mubr.msk.f32.gmra.mrb[28].mxu0 %vm211_vm1, %v4083_v16 }
  0xee   : > { %4659 = vmatprep.mubr.msk.f32.mxu1 %vm211_vm1, %v6313_v21  ;;  %4883 = vmatprep.mubr.msk.f32.mxu0 %vm211_vm1, %v4084_v18 }
  0xf1   : > { %4660 = vmatmul.mubr.msk.f32.gmra.mrb[14].mxu1 %vm211_vm1, %v6314_v0  ;;  %4884 = vmatmul.mubr.msk.f32.gmra.mrb[30].mxu0 %vm211_vm1, %v4085_v24 }
  0xf2   : > { %4662 = vmatprep.mubr.msk.f32.mxu1 %vm211_vm1, %v6315_v29  ;;  %4888 = vmatprep.mubr.msk.f32.mxu0 %vm211_vm1, %v5407_v32  ;;  %v6319_v32 = vld [vmem:[#allocation17_spill] sm:$0xff] }
  0xf5   : > { %4663 = vmatmul.mubr.msk.f32.gmra.mrb[16].mxu1 %vm211_vm1, %v6316_v30  ;;  %4889 = vmatmul.mubr.msk.f32.vlgmr.msra.gmra.mrb[0].mxu0 %vm211_vm1, %v5423_v34  ;;  %v4148_v34 = vld [vmem:[%s5262_s22 + $0x1b4] sm:$0xff] }
  0xf6   : > { %4665 = vmatprep.mubr.msk.f32.mxu1 %vm211_vm1, %v6317_v11  ;;  %4891 = vmatprep.mubr.msk.f32.mxu0 %vm211_vm1, %v5429_v36  ;;  %v4149_v36 = vld [vmem:[%s5262_s22 + $0x1bc] sm:$0xff] }
  0xf9   : > { %4666 = vmatmul.mubr.msk.f32.gmra.mrb[18].mxu1 %vm211_vm1, %v5745_v57  ;;  %4892 = vmatmul.mubr.msk.f32.gmra.mrb[2].mxu0 %vm211_vm1, %v5443_v38  ;;  %v4151_v38 = vld [vmem:[%s5262_s22 + $0x1d4] sm:$0xff] }
  0xfa   : > { %4668 = vmatprep.mubr.msk.f32.mxu1 %vm211_vm1, %v5748_v62  ;;  %4894 = vmatprep.mubr.msk.f32.mxu0 %vm211_vm1, %v5449_v40 }
  0xfd   : > { %4669 = vmatmul.mubr.msk.f32.gmra.mrb[20].mxu1 %vm211_vm1, %v5759_v51  ;;  %4895 = vmatmul.mubr.msk.f32.gmra.mrb[4].mxu0 %vm211_vm1, %v5463_v42 }
  0xfe   : > { %4671 = vmatprep.mubr.msk.f32.mxu1 %vm211_vm1, %v5762_v47  ;;  %4897 = vmatprep.mubr.msk.f32.mxu0 %vm211_vm1, %v5469_v44 }
 0x101   : > { %4672 = vmatmul.mubr.msk.f32.gmra.mrb[22].mxu1 %vm211_vm1, %v5773_v53  ;;  %4898 = vmatmul.mubr.msk.f32.gmra.mrb[6].mxu0 %vm211_vm1, %v5483_v46 }
 0x102   : > { %4674 = vmatprep.mubr.msk.f32.mxu1 %vm211_vm1, %v5776_v43  ;;  %4900 = vmatprep.mubr.msk.f32.mxu0 %vm211_vm1, %v5489_v48 }
 0x105   : > { %4675 = vmatmul.mubr.msk.f32.gmra.mrb[24].mxu1 %vm211_vm1, %v5787_v45  ;;  %4901 = vmatmul.mubr.msk.f32.gmra.mrb[8].mxu0 %vm211_vm1, %v5503_v50 }
 0x106   : > { %4677 = vmatprep.mubr.msk.f32.mxu1 %vm211_vm1, %v5790_v49  ;;  %4903 = vmatprep.mubr.msk.f32.mxu0 %vm211_vm1, %v5509_v52 }
 0x109   : > { %4678 = vmatmul.mubr.msk.f32.gmra.mrb[26].mxu1 %vm211_vm1, %v5801_v7  ;;  %4904 = vmatmul.mubr.msk.f32.gmra.mrb[10].mxu0 %vm211_vm1, %v5523_v54 }
 0x10a   : > { %4680 = vmatprep.mubr.msk.f32.mxu1 %vm211_vm1, %v5840_v61  ;;  %4906 = vmatprep.mubr.msk.f32.mxu0 %vm211_vm1, %v5527_v56 }
 0x10d   : > { %4681 = vmatmul.mubr.msk.f32.gmra.mrb[28].mxu1 %vm211_vm1, %v5851_v26  ;;  %4907 = vmatmul.mubr.msk.f32.gmra.mrb[12].mxu0 %vm211_vm1, %v5538_v58 }
 0x10e   : > { %4683 = vmatprep.mubr.msk.f32.mxu1 %vm211_vm1, %v5854_v27  ;;  %4909 = vmatprep.mubr.msk.f32.mxu0 %vm211_vm1, %v5542_v60 }
 0x111   : > { %4684 = vmatmul.mubr.msk.f32.gmra.mrb[30].mxu1 %vm211_vm1, %v5865_v28  ;;  %4910 = vmatmul.mubr.msk.f32.gmra.mrb[14].mxu0 %vm211_vm1, %v5557_v63 }
 0x112   : > { %4712 = vmatprep.mubr.msk.f32.mxu1 %vm211_vm1, %v5404_v31  ;;  %4912 = vmatprep.mubr.msk.f32.mxu0 %vm211_vm1, %v5565_v2  ;;  %v6318_v31 = vld [vmem:[#allocation15_spill] sm:$0xff] }
 0x115   : > { %4713 = vmatmul.mubr.msk.f32.vlgmr.msra.gmra.mrb[16].mxu1 %vm211_vm1, %v5420_v33  ;;  %4913 = vmatmul.mubr.msk.f32.gmra.mrb[16].mxu0 %vm211_vm1, %v5580_v4  ;;  %v6320_v33 = vld [vmem:[#allocation19_spill] sm:$0xff] }
 0x116   : > { %4715 = vmatprep.mubr.msk.f32.mxu1 %vm211_vm1, %v5426_v35  ;;  %4915 = vmatprep.mubr.msk.f32.mxu0 %vm211_vm1, %v5586_v6  ;;  %v6321_v35 = vld [vmem:[#allocation21_spill] sm:$0xff] }
 0x119   : > { %4716 = vmatmul.mubr.msk.f32.gmra.mrb[18].mxu1 %vm211_vm1, %v5440_v37  ;;  %4916 = vmatmul.mubr.msk.f32.gmra.mrb[18].mxu0 %vm211_vm1, %v5600_v8  ;;  %v4150_v37 = vld [vmem:[%s5262_s22 + $0x1cc] sm:$0xff] }
 0x11a   : > { %4718 = vmatprep.mubr.msk.f32.mxu1 %vm211_vm1, %v5446_v39  ;;  %4918 = vmatprep.mubr.msk.f32.mxu0 %vm211_vm1, %v5606_v10 }
 0x11d   : > { %4719 = vmatmul.mubr.msk.f32.gmra.mrb[20].mxu1 %vm211_vm1, %v5460_v41  ;;  %4919 = vmatmul.mubr.msk.f32.gmra.mrb[20].mxu0 %vm211_vm1, %v5620_v12 }
 0x11e   : > { %4721 = vmatprep.mubr.msk.f32.mxu1 %vm211_vm1, %v6296_v15  ;;  %4921 = vmatprep.mubr.msk.f32.mxu0 %vm211_vm1, %v5626_v55 }
 0x121   : > { %4722 = vmatmul.mubr.msk.f32.gmra.mrb[22].mxu1 %vm211_vm1, %v6298_v17  ;;  %4922 = vmatmul.mubr.msk.f32.gmra.mrb[22].mxu0 %vm211_vm1, %v5640_v59 }
 0x122   : > { %4724 = vmatprep.mubr.msk.f32.mxu1 %vm211_vm1, %v6300_v19  ;;  %4924 = vmatprep.mubr.msk.f32.mxu0 %vm211_vm1, %v6318_v31 }
 0x125   : > { %4725 = vmatmul.mubr.msk.f32.gmra.mrb[24].mxu1 %vm211_vm1, %v6302_v20  ;;  %4925 = vmatmul.mubr.msk.f32.gmra.mrb[24].mxu0 %vm211_vm1, %v6319_v32 }
 0x126   : > { %4727 = vmatprep.mubr.msk.f32.mxu1 %vm211_vm1, %v6304_v22  ;;  %4927 = vmatprep.mubr.msk.f32.mxu0 %vm211_vm1, %v6320_v33 }
 0x129   : > { %4728 = vmatmul.mubr.msk.f32.gmra.mrb[26].mxu1 %vm211_vm1, %v6306_v25  ;;  %4928 = vmatmul.mubr.msk.f32.gmra.mrb[26].mxu0 %vm211_vm1, %v6321_v35 }
 0x12a   : > { %4730 = vmatprep.mubr.msk.f32.mxu1 %vm211_vm1, %v5984_v23  ;;  %4930 = vmatprep.mubr.msk.f32.mxu0 %vm211_vm1, %v4148_v34 }
 0x12d   : > { %4731 = vmatmul.mubr.msk.f32.gmra.mrb[28].mxu1 %vm211_vm1, %v5995_v3  ;;  %4931 = vmatmul.mubr.msk.f32.gmra.mrb[28].mxu0 %vm211_vm1, %v4149_v36 }
 0x12e   : > { %4733 = vmatprep.mubr.msk.f32.mxu1 %vm211_vm1, %v5998_v5  ;;  %4933 = vmatprep.mubr.msk.f32.mxu0 %vm211_vm1, %v4150_v37 }
 0x131   : > { %4734 = vmatmul.mubr.msk.f32.gmra.mrb[30].mxu1 %vm211_vm1, %v6009_v9  ;;  %4934 = vmatmul.mubr.msk.f32.gmra.mrb[30].mxu0 %vm211_vm1, %v4151_v38 }
 0x1a8   : > { %v4640_v39 = vpop.f32.mrb[0].mxu1 }
 0x1a9   : > { %v1451_v40 = vpop.f32.mrb[1].mxu1 }
 0x1ac   : > { %v4643_v41 = vpop.f32.mrb[2].mxu1 }
 0x1ad   : > { %v1461_v42 = vpop.f32.mrb[3].mxu1 }
 0x1b0   : > { %v4646_v43 = vpop.f32.mrb[4].mxu1 }
 0x1b1   : > { %v1471_v44 = vpop.f32.mrb[5].mxu1 }
 0x1b4   : > { %v4649_v45 = vpop.f32.mrb[6].mxu1 }
 0x1b5   : > { %v1481_v46 = vpop.f32.mrb[7].mxu1 }
 0x1b8   : > { %v4652_v47 = vpop.f32.mrb[8].mxu1 }
 0x1b9   : > { %v1491_v48 = vpop.f32.mrb[9].mxu1 }
 0x1bc   : > { %v4655_v49 = vpop.f32.mrb[10].mxu1 }
 0x1bd   : > { %v1501_v50 = vpop.f32.mrb[11].mxu1 }
 0x1c0   : > { %v4658_v51 = vpop.f32.mrb[12].mxu1 }
 0x1c1   : > { %v1511_v52 = vpop.f32.mrb[13].mxu1 }
 0x1c4   : > { %v4661_v53 = vpop.f32.mrb[14].mxu1 }
 0x1c5   : > { %v1521_v54 = vpop.f32.mrb[15].mxu1 }
 0x1c8   : > { %v4890_v56 = vpop.f32.mrb[0].mxu0 }
 0x1c9   : > { %v4938_v58 = vadd.f32 %v4890_v56, %v4640_v39  ;;  %v3402_v60 = vpop.f32.mrb[1].mxu0 }
 0x1ca   : > { %v4939_v63 = vadd.f32 %v3402_v60, %v1451_v40 }
 0x1cb   : > { %3595 = vst.msk [vmem:[%s6163_s8 + $0x8] sm:$0xff] %vm3593_vm2, %v4938_v58 }
 0x1cc   : > { %3594 = vst.msk [vmem:[%s6163_s8] sm:$0xff] %vm3593_vm2, %v4939_v63  ;;  %v4893_v2 = vpop.f32.mrb[2].mxu0 }
 0x1cd   : > { %v4940_v4 = vadd.f32 %v4893_v2, %v4643_v41  ;;  %v3412_v6 = vpop.f32.mrb[3].mxu0 }
 0x1ce   : > { %v4941_v7 = vadd.f32 %v3412_v6, %v1461_v42 }
 0x1cf   : > { %3597 = vst.msk [vmem:[%s6163_s8 + $0x18] sm:$0xff] %vm3593_vm2, %v4940_v4 }
 0x1d0   : > { %3596 = vst.msk [vmem:[%s6163_s8 + $0x10] sm:$0xff] %vm3593_vm2, %v4941_v7  ;;  %v4896_v8 = vpop.f32.mrb[4].mxu0 }
 0x1d1   : > { %v4942_v10 = vadd.f32 %v4896_v8, %v4646_v43  ;;  %v3422_v12 = vpop.f32.mrb[5].mxu0 }
 0x1d2   : > { %v4943_v55 = vadd.f32 %v3422_v12, %v1471_v44 }
 0x1d3   : > { %3599 = vst.msk [vmem:[%s6163_s8 + $0x28] sm:$0xff] %vm3593_vm2, %v4942_v10 }
 0x1d4   : > { %3598 = vst.msk [vmem:[%s6163_s8 + $0x20] sm:$0xff] %vm3593_vm2, %v4943_v55  ;;  %v4899_v57 = vpop.f32.mrb[6].mxu0 }
 0x1d5   : > { %v4944_v59 = vadd.f32 %v4899_v57, %v4649_v45  ;;  %v3432_v62 = vpop.f32.mrb[7].mxu0 }
 0x1d6   : > { %v4945_v61 = vadd.f32 %v3432_v62, %v1481_v46 }
 0x1d7   : > { %3601 = vst.msk [vmem:[%s6163_s8 + $0x38] sm:$0xff] %vm3593_vm2, %v4944_v59 }
 0x1d8   : > { %3600 = vst.msk [vmem:[%s6163_s8 + $0x30] sm:$0xff] %vm3593_vm2, %v4945_v61  ;;  %v4902_v26 = vpop.f32.mrb[8].mxu0 }
 0x1d9   : > { %v4946_v27 = vadd.f32 %v4902_v26, %v4652_v47  ;;  %v3442_v28 = vpop.f32.mrb[9].mxu0 }
 0x1da   : > { %v4947_v15 = vadd.f32 %v3442_v28, %v1491_v48 }
 0x1db   : > { %3603 = vst.msk [vmem:[%s6163_s8 + $0x48] sm:$0xff] %vm3593_vm2, %v4946_v27 }
 0x1dc   : > { %3602 = vst.msk [vmem:[%s6163_s8 + $0x40] sm:$0xff] %vm3593_vm2, %v4947_v15  ;;  %v4905_v17 = vpop.f32.mrb[10].mxu0 }
 0x1dd   : > { %v4948_v19 = vadd.f32 %v4905_v17, %v4655_v49  ;;  %v3452_v20 = vpop.f32.mrb[11].mxu0 }
 0x1de   : > { %v4949_v22 = vadd.f32 %v3452_v20, %v1501_v50 }
 0x1df   : > { %3605 = vst.msk [vmem:[%s6163_s8 + $0x58] sm:$0xff] %vm3593_vm2, %v4948_v19 }
 0x1e0   : > { %3604 = vst.msk [vmem:[%s6163_s8 + $0x50] sm:$0xff] %vm3593_vm2, %v4949_v22  ;;  %v4908_v23 = vpop.f32.mrb[12].mxu0 }
 0x1e1   : > { %v4950_v25 = vadd.f32 %v4908_v23, %v4658_v51  ;;  %v3462_v3 = vpop.f32.mrb[13].mxu0 }
 0x1e2   : > { %v4951_v5 = vadd.f32 %v3462_v3, %v1511_v52 }
 0x1e3   : > { %3607 = vst.msk [vmem:[%s6163_s8 + $0x68] sm:$0xff] %vm3593_vm2, %v4950_v25 }
 0x1e4   : > { %3606 = vst.msk [vmem:[%s6163_s8 + $0x60] sm:$0xff] %vm3593_vm2, %v4951_v5  ;;  %v4911_v9 = vpop.f32.mrb[14].mxu0 }
 0x1e5   : > { %v4952_v13 = vadd.f32 %v4911_v9, %v4661_v53  ;;  %v3472_v14 = vpop.f32.mrb[15].mxu0 }
 0x1e6   : > { %v4953_v16 = vadd.f32 %v3472_v14, %v1521_v54 }
 0x1e7   : > { %3609 = vst.msk [vmem:[%s6163_s8 + $0x78] sm:$0xff] %vm3593_vm2, %v4952_v13 }
 0x1e8   : > { %3608 = vst.msk [vmem:[%s6163_s8 + $0x70] sm:$0xff] %vm3593_vm2, %v4953_v16  ;;  %v4714_v18 = vpop.f32.mrb[16].mxu1  ;;  %v4914_v1 = vpop.f32.mrb[16].mxu0 }
 0x1e9   : > { %v4954_v21 = vadd.f32 %v4914_v1, %v4714_v18  ;;  %v1921_v24 = vpop.f32.mrb[17].mxu1  ;;  %v3482_v0 = vpop.f32.mrb[17].mxu0 }
 0x1ea   : > { %v4955_v29 = vadd.f32 %v3482_v0, %v1921_v24 }
 0x1eb   : > { %3611 = vst.msk [vmem:[%s6163_s8 + $0x88] sm:$0xff] %vm3593_vm2, %v4954_v21 }
 0x1ec   : > { %3610 = vst.msk [vmem:[%s6163_s8 + $0x80] sm:$0xff] %vm3593_vm2, %v4955_v29  ;;  %v4717_v30 = vpop.f32.mrb[18].mxu1  ;;  %v4917_v11 = vpop.f32.mrb[18].mxu0 }
 0x1ed   : > { %v4956_v31 = vadd.f32 %v4917_v11, %v4717_v30  ;;  %v1931_v32 = vpop.f32.mrb[19].mxu1  ;;  %v3492_v33 = vpop.f32.mrb[19].mxu0 }
 0x1ee   : > { %v4957_v34 = vadd.f32 %v3492_v33, %v1931_v32 }
 0x1ef   : > { %3613 = vst.msk [vmem:[%s6163_s8 + $0x98] sm:$0xff] %vm3593_vm2, %v4956_v31 }
 0x1f0   : > { %3612 = vst.msk [vmem:[%s6163_s8 + $0x90] sm:$0xff] %vm3593_vm2, %v4957_v34  ;;  %v4720_v35 = vpop.f32.mrb[20].mxu1  ;;  %v4920_v36 = vpop.f32.mrb[20].mxu0 }
 0x1f1   : > { %v4958_v37 = vadd.f32 %v4920_v36, %v4720_v35  ;;  %v1941_v38 = vpop.f32.mrb[21].mxu1  ;;  %v3502_v39 = vpop.f32.mrb[21].mxu0 }
 0x1f2   : > { %v4959_v40 = vadd.f32 %v3502_v39, %v1941_v38 }
 0x1f3   : > { %3615 = vst.msk [vmem:[%s6163_s8 + $0xa8] sm:$0xff] %vm3593_vm2, %v4958_v37 }
 0x1f4   : > { %3614 = vst.msk [vmem:[%s6163_s8 + $0xa0] sm:$0xff] %vm3593_vm2, %v4959_v40  ;;  %v4723_v41 = vpop.f32.mrb[22].mxu1  ;;  %v4923_v42 = vpop.f32.mrb[22].mxu0 }
 0x1f5   : > { %v4960_v43 = vadd.f32 %v4923_v42, %v4723_v41  ;;  %v1951_v44 = vpop.f32.mrb[23].mxu1  ;;  %v3512_v45 = vpop.f32.mrb[23].mxu0 }
 0x1f6   : > { %v4961_v46 = vadd.f32 %v3512_v45, %v1951_v44 }
 0x1f7   : > { %3617 = vst.msk [vmem:[%s6163_s8 + $0xb8] sm:$0xff] %vm3593_vm2, %v4960_v43 }
 0x1f8   : > { %3616 = vst.msk [vmem:[%s6163_s8 + $0xb0] sm:$0xff] %vm3593_vm2, %v4961_v46  ;;  %v4726_v47 = vpop.f32.mrb[24].mxu1  ;;  %v4926_v48 = vpop.f32.mrb[24].mxu0 }
 0x1f9   : > { %v4962_v49 = vadd.f32 %v4926_v48, %v4726_v47  ;;  %v1961_v50 = vpop.f32.mrb[25].mxu1  ;;  %v3522_v51 = vpop.f32.mrb[25].mxu0 }
 0x1fa   : > { %v4963_v52 = vadd.f32 %v3522_v51, %v1961_v50 }
 0x1fb   : > { %3619 = vst.msk [vmem:[%s6163_s8 + $0xc8] sm:$0xff] %vm3593_vm2, %v4962_v49 }
 0x1fc   : > { %3618 = vst.msk [vmem:[%s6163_s8 + $0xc0] sm:$0xff] %vm3593_vm2, %v4963_v52  ;;  %v4729_v53 = vpop.f32.mrb[26].mxu1  ;;  %v4929_v54 = vpop.f32.mrb[26].mxu0 }
 0x1fd   : > { %v4964_v56 = vadd.f32 %v4929_v54, %v4729_v53  ;;  %v1971_v58 = vpop.f32.mrb[27].mxu1  ;;  %v3532_v60 = vpop.f32.mrb[27].mxu0 }
 0x1fe   : > { %v4965_v63 = vadd.f32 %v3532_v60, %v1971_v58 }
 0x1ff   : > { %3621 = vst.msk [vmem:[%s6163_s8 + $0xd8] sm:$0xff] %vm3593_vm2, %v4964_v56 }
 0x200   : > { %3620 = vst.msk [vmem:[%s6163_s8 + $0xd0] sm:$0xff] %vm3593_vm2, %v4965_v63  ;;  %v4732_v2 = vpop.f32.mrb[28].mxu1  ;;  %v4932_v4 = vpop.f32.mrb[28].mxu0 }
 0x201   : > { %v4966_v6 = vadd.f32 %v4932_v4, %v4732_v2  ;;  %v1981_v7 = vpop.f32.mrb[29].mxu1  ;;  %v3542_v8 = vpop.f32.mrb[29].mxu0 }
 0x202   : > { %v4967_v10 = vadd.f32 %v3542_v8, %v1981_v7 }
 0x203   : > { %3623 = vst.msk [vmem:[%s6163_s8 + $0xe8] sm:$0xff] %vm3593_vm2, %v4966_v6 }
 0x204   : > { %3622 = vst.msk [vmem:[%s6163_s8 + $0xe0] sm:$0xff] %vm3593_vm2, %v4967_v10  ;;  %v4735_v12 = vpop.f32.mrb[30].mxu1  ;;  %v4935_v55 = vpop.f32.mrb[30].mxu0 }
 0x205   : > { %v4968_v57 = vadd.f32 %v4935_v55, %v4735_v12  ;;  %v1991_v59 = vpop.f32.mrb[31].mxu1  ;;  %v3552_v62 = vpop.f32.mrb[31].mxu0 }
 0x206   : > { %v4969_v61 = vadd.f32 %v3552_v62, %v1991_v59 }
 0x207   : > { %3625 = vst.msk [vmem:[%s6163_s8 + $0xf8] sm:$0xff] %vm3593_vm2, %v4968_v57 }
 0x208   : > { %3624 = vst.msk [vmem:[%s6163_s8 + $0xf0] sm:$0xff] %vm3593_vm2, %v4969_v61 }
 0x209 PF: > { %s12_s9 = sadd.s32 1, %s5209_s9  }
 0x20a   : > { %p9_p4 = scmp.ge.s32.totalorder %s12_s9, 4  }
 0x20c   :  { %11 = sbr.rel (!%p9_p4) target bundleno = 1 (0x1), region = 68 }

</bundles_post_ra>
